<compile_context>
chip_gen: v7x
topology: tpu7x:2x2x1
jax: 0.10.0
libtpu: 0.0.40
codegen_flags: <defaults>
</compile_context>

<pallas_src>
import functools

import jax
import jax.numpy as jnp
from jax.experimental import pallas as pl
from jax.experimental.pallas import tpu as pltpu


def _round_up(x, m):
    return ((x + m - 1) // m) * m


# ----------------------------------------------------------------------------
# Pallas kernel: fused BiLocalFuse forward on one (C, TM) pixel tile.
# Weights arrive transposed as (Cout, Cin) bf16; biases as (Cout, 1) f32.
# ----------------------------------------------------------------------------
def _bilocal_fuse_kernel(
    xh_ref, xl_ref,
    w_fh_ref, b_fh_ref,          # feature_high: Conv(Ch->Co)+BN folded, ReLU
    w_td1_ref, b_td1_ref,        # topdown stage1: Conv(Co->Cb)+BN folded, ReLU
    w_td2_ref, b_td2_ref,        # topdown stage2: Conv(Cb->Co)+BN folded, Sigmoid
    w_bu1_ref, b_bu1_ref,        # bottomup stage1: Conv(Co->Cb)+BN folded, ReLU
    w_bu2_ref, b_bu2_ref,        # bottomup stage2: Conv(Cb->Co)+BN folded, Sigmoid
    out_ref,
):
    xh = xh_ref[...]                                   # (Ch, TM) bf16
    xl = xl_ref[...]                                   # (Co, TM) bf16

    # feature_high: xh_f = ReLU(W @ xh + b)
    xh_f = jnp.dot(w_fh_ref[...], xh, preferred_element_type=jnp.float32)
    xh_f = jnp.maximum(xh_f + b_fh_ref[...], 0.0)      # (Co, TM) f32
    xh_f_lo = xh_f.astype(jnp.bfloat16)

    # topdown attention weights from xh_f
    t = jnp.dot(w_td1_ref[...], xh_f_lo, preferred_element_type=jnp.float32)
    t = jnp.maximum(t + b_td1_ref[...], 0.0).astype(jnp.bfloat16)   # (Cb, TM)
    t = jnp.dot(w_td2_ref[...], t, preferred_element_type=jnp.float32)
    topdown_w = jax.nn.sigmoid(t + b_td2_ref[...])                  # (Co, TM) f32

    # bottomup attention weights from xl
    b = jnp.dot(w_bu1_ref[...], xl, preferred_element_type=jnp.float32)
    b = jnp.maximum(b + b_bu1_ref[...], 0.0).astype(jnp.bfloat16)   # (Cb, TM)
    b = jnp.dot(w_bu2_ref[...], b, preferred_element_type=jnp.float32)
    bottomup_w = jax.nn.sigmoid(b + b_bu2_ref[...])                 # (Co, TM) f32

    out_ref[...] = topdown_w * xl.astype(jnp.float32) + bottomup_w * xh_f


# ----------------------------------------------------------------------------
# Parameter construction & BN folding (plain-JAX glue).
# ----------------------------------------------------------------------------
def _fold_conv_bn(w, b, gamma, beta, mean, var, eps=1e-5):
    """Fold inference-mode BatchNorm into a 1x1 conv.

    w: (Cin, Cout), b: (Cout,).  Returns (w_eff, b_eff), y = x @ w_eff + b_eff.
    """
    scale = gamma / jnp.sqrt(var + eps)
    w_eff = w * scale[None, :]
    b_eff = b * scale + (beta - mean * scale)
    return w_eff, b_eff.reshape(1, -1)


def make_params(key, ch_high, ch_out, ch_bott, dtype=jnp.float32):
    def conv_bn(k, cin, cout):
        k1, k2, k3, k4, k5, k6 = jax.random.split(k, 6)
        w = jax.random.normal(k1, (cin, cout), dtype) * 0.1
        b = jax.random.normal(k2, (cout,), dtype) * 0.1
        gamma = jnp.abs(jax.random.normal(k3, (cout,), dtype)) + 0.5
        beta = jax.random.normal(k4, (cout,), dtype) * 0.1
        mean = jax.random.normal(k5, (cout,), dtype) * 0.1
        var = jnp.abs(jax.random.normal(k6, (cout,), dtype)) + 0.5
        return _fold_conv_bn(w, b, gamma, beta, mean, var)

    keys = jax.random.split(key, 5)
    w_fh, b_fh = conv_bn(keys[0], ch_high, ch_out)
    w_td1, b_td1 = conv_bn(keys[1], ch_out, ch_bott)
    w_td2, b_td2 = conv_bn(keys[2], ch_bott, ch_out)
    w_bu1, b_bu1 = conv_bn(keys[3], ch_out, ch_bott)
    w_bu2, b_bu2 = conv_bn(keys[4], ch_bott, ch_out)
    return (w_fh, b_fh, w_td1, b_td1, w_td2, b_td2,
            w_bu1, b_bu1, w_bu2, b_bu2)


# ----------------------------------------------------------------------------
# Wrapper: NCHW -> (N, C, HW) (free reshape) -> Pallas -> NCHW
# ----------------------------------------------------------------------------
@functools.partial(jax.jit, static_argnames=("tile_m",))
def bilocal_fuse(xh, xl, params, *, tile_m=2048):
    (w_fh, b_fh, w_td1, b_td1, w_td2, b_td2,
     w_bu1, b_bu1, w_bu2, b_bu2) = params

    n, ch, h, w = xh.shape
    co = xl.shape[1]
    cb = w_td1.shape[1]
    hw = h * w

    # Pick the largest lane-aligned tile that the feature map supports; pad HW
    # up to a multiple of the tile instead of requiring exact divisibility.
    tile_m = _round_up(tile_m, 128)
    tm = min(tile_m, _round_up(hw, 128))
    hw_pad = _round_up(hw, tm)

    xh3 = xh.reshape(n, ch, hw)
    xl3 = xl.reshape(n, co, hw)
    if hw_pad != hw:
        pad = hw_pad - hw
        xh3 = jnp.pad(xh3, ((0, 0), (0, 0), (0, pad)))
        xl3 = jnp.pad(xl3, ((0, 0), (0, 0), (0, pad)))
    xh3 = xh3.astype(jnp.bfloat16)
    xl3 = xl3.astype(jnp.bfloat16)

    # Transpose folded weights to (Cout, Cin) bf16; biases to (Cout, 1) f32.
    def prep(wm, bm):
        return wm.T.astype(jnp.bfloat16), bm.reshape(-1, 1).astype(jnp.float32)

    w_fh_t, b_fh_c = prep(w_fh, b_fh)
    w_td1_t, b_td1_c = prep(w_td1, b_td1)
    w_td2_t, b_td2_c = prep(w_td2, b_td2)
    w_bu1_t, b_bu1_c = prep(w_bu1, b_bu1)
    w_bu2_t, b_bu2_c = prep(w_bu2, b_bu2)

    full = lambda s: pl.BlockSpec(s, lambda b, i: (0, 0))  # resident weights

    out3 = pl.pallas_call(
        _bilocal_fuse_kernel,
        out_shape=jax.ShapeDtypeStruct((n, co, hw_pad), jnp.float32),
        grid_spec=pltpu.PrefetchScalarGridSpec(
            num_scalar_prefetch=0,
            grid=(n, hw_pad // tm),
            in_specs=[
                pl.BlockSpec((None, ch, tm), lambda b, i: (b, 0, i)),  # xh tile
                pl.BlockSpec((None, co, tm), lambda b, i: (b, 0, i)),  # xl tile
                full((co, ch)), full((co, 1)),                         # feature_high
                full((cb, co)), full((cb, 1)),                         # topdown 1
                full((co, cb)), full((co, 1)),                         # topdown 2
                full((cb, co)), full((cb, 1)),                         # bottomup 1
                full((co, cb)), full((co, 1)),                         # bottomup 2
            ],
            out_specs=pl.BlockSpec((None, co, tm), lambda b, i: (b, 0, i)),
        ),
        compiler_params=pltpu.CompilerParams(
            dimension_semantics=("parallel", "parallel"),
            vmem_limit_bytes=48 * 1024 * 1024,
        ),
    )(xh3, xl3,
      w_fh_t, b_fh_c, w_td1_t, b_td1_c, w_td2_t, b_td2_c,
      w_bu1_t, b_bu1_c, w_bu2_t, b_bu2_c)

    if hw_pad != hw:
        out3 = out3[:, :, :hw]
    return out3.reshape(n, co, h, w)


# Pure-JAX f32 reference (same math, pixel-major) for a sanity check.
def bilocal_fuse_ref(xh, xl, params):
    (w_fh, b_fh, w_td1, b_td1, w_td2, b_td2,
     w_bu1, b_bu1, w_bu2, b_bu2) = params
    n, ch, h, w = xh.shape
    co = xl.shape[1]
    xh2 = jnp.transpose(xh, (0, 2, 3, 1)).reshape(-1, ch)
    xl2 = jnp.transpose(xl, (0, 2, 3, 1)).reshape(-1, co)
    xh_f = jnp.maximum(xh2 @ w_fh + b_fh, 0.0)
    td = jax.nn.sigmoid(jnp.maximum(xh_f @ w_td1 + b_td1, 0.0) @ w_td2 + b_td2)
    bu = jax.nn.sigmoid(jnp.maximum(xl2 @ w_bu1 + b_bu1, 0.0) @ w_bu2 + b_bu2)
    out2 = td * xl2 + bu * xh_f
    return jnp.transpose(out2.reshape(n, h, w, co), (0, 3, 1, 2))


if __name__ == "__main__":
    key = jax.random.PRNGKey(0)
    k_xh, k_xl, k_p = jax.random.split(key, 3)

    # Small shapes: in_high_channels=16, in_low_channels=out_channels=32, r=4.
    N, CH_HIGH, CO, R, H, W = 2, 16, 32, 4, 16, 16
    CB = CO // R

    xh = jax.random.normal(k_xh, (N, CH_HIGH, H, W), jnp.float32)
    xl = jax.random.normal(k_xl, (N, CO, H, W), jnp.float32)
    params = make_params(k_p, CH_HIGH, CO, CB)

    out = bilocal_fuse(xh, xl, params)
    jax.block_until_ready(out)

    ref = bilocal_fuse_ref(xh, xl, params)
    assert out.shape == (N, CO, H, W)
    # bf16 matmul operands => looser tolerance vs the f32 reference.
    assert jnp.max(jnp.abs(out - ref)) < 1e-1, "mismatch vs reference"

    print("KERNEL_OK")
</pallas_src>

<mosaic_0001>
module attributes {stable_mosaic.version = 11 : i64} {
  func.func @_bilocal_fuse_kernel(%arg0: i32, %arg1: i32, %arg2: memref<1x16x256xbf16, #tpu.memory_space<vmem>>, %arg3: memref<1x32x256xbf16, #tpu.memory_space<vmem>>, %arg4: memref<32x16xbf16, #tpu.memory_space<vmem>>, %arg5: memref<32x1xf32, #tpu.memory_space<vmem>>, %arg6: memref<8x32xbf16, #tpu.memory_space<vmem>>, %arg7: memref<8x1xf32, #tpu.memory_space<vmem>>, %arg8: memref<32x8xbf16, #tpu.memory_space<vmem>>, %arg9: memref<32x1xf32, #tpu.memory_space<vmem>>, %arg10: memref<8x32xbf16, #tpu.memory_space<vmem>>, %arg11: memref<8x1xf32, #tpu.memory_space<vmem>>, %arg12: memref<32x8xbf16, #tpu.memory_space<vmem>>, %arg13: memref<32x1xf32, #tpu.memory_space<vmem>>, %arg14: memref<1x32x256xf32, #tpu.memory_space<vmem>>) attributes {dimension_semantics = [#tpu.dimension_semantics<parallel>, #tpu.dimension_semantics<parallel>], iteration_bounds = array<i64: 2, 1>, scalar_prefetch = 0 : i64, scratch_operands = 0 : i64, tpu.core_type = #tpu.core_type<tc>, window_params = [{transform_indices = @transform_0, window_bounds = array<i64: 1, 16, 256>}, {transform_indices = @transform_1, window_bounds = array<i64: 1, 32, 256>}, {pipeline_mode = #tpu.pipeline_mode<synchronous>, transform_indices = @transform_2, window_bounds = array<i64: 32, 16>}, {pipeline_mode = #tpu.pipeline_mode<synchronous>, transform_indices = @transform_3, window_bounds = array<i64: 32, 1>}, {pipeline_mode = #tpu.pipeline_mode<synchronous>, transform_indices = @transform_4, window_bounds = array<i64: 8, 32>}, {pipeline_mode = #tpu.pipeline_mode<synchronous>, transform_indices = @transform_5, window_bounds = array<i64: 8, 1>}, {pipeline_mode = #tpu.pipeline_mode<synchronous>, transform_indices = @transform_6, window_bounds = array<i64: 32, 8>}, {pipeline_mode = #tpu.pipeline_mode<synchronous>, transform_indices = @transform_7, window_bounds = array<i64: 32, 1>}, {pipeline_mode = #tpu.pipeline_mode<synchronous>, transform_indices = @transform_8, window_bounds = array<i64: 8, 32>}, {pipeline_mode = #tpu.pipeline_mode<synchronous>, transform_indices = @transform_9, window_bounds = array<i64: 8, 1>}, {pipeline_mode = #tpu.pipeline_mode<synchronous>, transform_indices = @transform_10, window_bounds = array<i64: 32, 8>}, {pipeline_mode = #tpu.pipeline_mode<synchronous>, transform_indices = @transform_11, window_bounds = array<i64: 32, 1>}, {transform_indices = @transform_12, window_bounds = array<i64: 1, 32, 256>}]} {
    %c0 = arith.constant 0 : index
    %c0_0 = arith.constant 0 : index
    %c0_1 = arith.constant 0 : index
    %0 = vector.load %arg2[%c0, %c0_0, %c0_1] : memref<1x16x256xbf16, #tpu.memory_space<vmem>>, vector<1x16x256xbf16>
    %1 = vector.shape_cast %0 : vector<1x16x256xbf16> to vector<16x256xbf16>
    %c0_2 = arith.constant 0 : index
    %c0_3 = arith.constant 0 : index
    %c0_4 = arith.constant 0 : index
    %2 = vector.load %arg3[%c0_2, %c0_3, %c0_4] : memref<1x32x256xbf16, #tpu.memory_space<vmem>>, vector<1x32x256xbf16>
    %3 = vector.shape_cast %2 : vector<1x32x256xbf16> to vector<32x256xbf16>
    %c0_5 = arith.constant 0 : index
    %c0_6 = arith.constant 0 : index
    %4 = vector.load %arg4[%c0_5, %c0_6] : memref<32x16xbf16, #tpu.memory_space<vmem>>, vector<32x16xbf16>
    %cst = arith.constant dense<0.000000e+00> : vector<32x256xf32>
    %5 = tpu.matmul %4, %1, %cst {dimension_numbers = #tpu.dot_dimension_numbers<[1], [0], [0], [1], [0, 0, 1, 1], [], []>} : vector<32x16xbf16>, vector<16x256xbf16>, vector<32x256xf32> -> vector<32x256xf32>
    %c0_7 = arith.constant 0 : index
    %c0_8 = arith.constant 0 : index
    %6 = vector.load %arg5[%c0_7, %c0_8] : memref<32x1xf32, #tpu.memory_space<vmem>>, vector<32x1xf32>
    %7 = vector.broadcast %6 : vector<32x1xf32> to vector<32x256xf32>
    %8 = arith.addf %5, %7 : vector<32x256xf32>
    %cst_9 = arith.constant 0.000000e+00 : f32
    %9 = vector.broadcast %cst_9 : f32 to vector<32x256xf32>
    %10 = arith.maximumf %8, %9 : vector<32x256xf32>
    %11 = arith.truncf %10 : vector<32x256xf32> to vector<32x256xbf16>
    %c0_10 = arith.constant 0 : index
    %c0_11 = arith.constant 0 : index
    %12 = vector.load %arg6[%c0_10, %c0_11] : memref<8x32xbf16, #tpu.memory_space<vmem>>, vector<8x32xbf16>
    %cst_12 = arith.constant dense<0.000000e+00> : vector<8x256xf32>
    %13 = tpu.matmul %12, %11, %cst_12 {dimension_numbers = #tpu.dot_dimension_numbers<[1], [0], [0], [1], [0, 0, 1, 1], [], []>} : vector<8x32xbf16>, vector<32x256xbf16>, vector<8x256xf32> -> vector<8x256xf32>
    %c0_13 = arith.constant 0 : index
    %c0_14 = arith.constant 0 : index
    %14 = vector.load %arg7[%c0_13, %c0_14] : memref<8x1xf32, #tpu.memory_space<vmem>>, vector<8x1xf32>
    %15 = vector.broadcast %14 : vector<8x1xf32> to vector<8x256xf32>
    %16 = arith.addf %13, %15 : vector<8x256xf32>
    %cst_15 = arith.constant 0.000000e+00 : f32
    %17 = vector.broadcast %cst_15 : f32 to vector<8x256xf32>
    %18 = arith.maximumf %16, %17 : vector<8x256xf32>
    %19 = arith.truncf %18 : vector<8x256xf32> to vector<8x256xbf16>
    %c0_16 = arith.constant 0 : index
    %c0_17 = arith.constant 0 : index
    %20 = vector.load %arg8[%c0_16, %c0_17] : memref<32x8xbf16, #tpu.memory_space<vmem>>, vector<32x8xbf16>
    %cst_18 = arith.constant dense<0.000000e+00> : vector<32x256xf32>
    %21 = tpu.matmul %20, %19, %cst_18 {dimension_numbers = #tpu.dot_dimension_numbers<[1], [0], [0], [1], [0, 0, 1, 1], [], []>} : vector<32x8xbf16>, vector<8x256xbf16>, vector<32x256xf32> -> vector<32x256xf32>
    %c0_19 = arith.constant 0 : index
    %c0_20 = arith.constant 0 : index
    %22 = vector.load %arg9[%c0_19, %c0_20] : memref<32x1xf32, #tpu.memory_space<vmem>>, vector<32x1xf32>
    %23 = vector.broadcast %22 : vector<32x1xf32> to vector<32x256xf32>
    %24 = arith.addf %21, %23 : vector<32x256xf32>
    %25 = arith.negf %24 : vector<32x256xf32>
    %26 = math.exp %25 : vector<32x256xf32>
    %cst_21 = arith.constant 1.000000e+00 : f32
    %27 = vector.broadcast %cst_21 : f32 to vector<32x256xf32>
    %28 = arith.addf %27, %26 : vector<32x256xf32>
    %29 = arith.divf %27, %28 : vector<32x256xf32>
    %c0_22 = arith.constant 0 : index
    %c0_23 = arith.constant 0 : index
    %30 = vector.load %arg10[%c0_22, %c0_23] : memref<8x32xbf16, #tpu.memory_space<vmem>>, vector<8x32xbf16>
    %cst_24 = arith.constant dense<0.000000e+00> : vector<8x256xf32>
    %31 = tpu.matmul %30, %3, %cst_24 {dimension_numbers = #tpu.dot_dimension_numbers<[1], [0], [0], [1], [0, 0, 1, 1], [], []>} : vector<8x32xbf16>, vector<32x256xbf16>, vector<8x256xf32> -> vector<8x256xf32>
    %c0_25 = arith.constant 0 : index
    %c0_26 = arith.constant 0 : index
    %32 = vector.load %arg11[%c0_25, %c0_26] : memref<8x1xf32, #tpu.memory_space<vmem>>, vector<8x1xf32>
    %33 = vector.broadcast %32 : vector<8x1xf32> to vector<8x256xf32>
    %34 = arith.addf %31, %33 : vector<8x256xf32>
    %cst_27 = arith.constant 0.000000e+00 : f32
    %35 = vector.broadcast %cst_27 : f32 to vector<8x256xf32>
    %36 = arith.maximumf %34, %35 : vector<8x256xf32>
    %37 = arith.truncf %36 : vector<8x256xf32> to vector<8x256xbf16>
    %c0_28 = arith.constant 0 : index
    %c0_29 = arith.constant 0 : index
    %38 = vector.load %arg12[%c0_28, %c0_29] : memref<32x8xbf16, #tpu.memory_space<vmem>>, vector<32x8xbf16>
    %cst_30 = arith.constant dense<0.000000e+00> : vector<32x256xf32>
    %39 = tpu.matmul %38, %37, %cst_30 {dimension_numbers = #tpu.dot_dimension_numbers<[1], [0], [0], [1], [0, 0, 1, 1], [], []>} : vector<32x8xbf16>, vector<8x256xbf16>, vector<32x256xf32> -> vector<32x256xf32>
    %c0_31 = arith.constant 0 : index
    %c0_32 = arith.constant 0 : index
    %40 = vector.load %arg13[%c0_31, %c0_32] : memref<32x1xf32, #tpu.memory_space<vmem>>, vector<32x1xf32>
    %41 = vector.broadcast %40 : vector<32x1xf32> to vector<32x256xf32>
    %42 = arith.addf %39, %41 : vector<32x256xf32>
    %43 = arith.negf %42 : vector<32x256xf32>
    %44 = math.exp %43 : vector<32x256xf32>
    %cst_33 = arith.constant 1.000000e+00 : f32
    %45 = vector.broadcast %cst_33 : f32 to vector<32x256xf32>
    %46 = arith.addf %45, %44 : vector<32x256xf32>
    %47 = arith.divf %45, %46 : vector<32x256xf32>
    %48 = arith.extf %3 : vector<32x256xbf16> to vector<32x256xf32>
    %49 = arith.mulf %29, %48 : vector<32x256xf32>
    %50 = arith.mulf %47, %10 : vector<32x256xf32>
    %51 = arith.addf %49, %50 : vector<32x256xf32>
    %c0_34 = arith.constant 0 : index
    %c0_35 = arith.constant 0 : index
    %c0_36 = arith.constant 0 : index
    %52 = vector.load %arg14[%c0_34, %c0_35, %c0_36] : memref<1x32x256xf32, #tpu.memory_space<vmem>>, vector<1x32x256xf32>
    %53 = vector.shape_cast %52 : vector<1x32x256xf32> to vector<32x256xf32>
    %54 = vector.shape_cast %51 : vector<32x256xf32> to vector<1x32x256xf32>
    tpu.vector_store %arg14[%c0_34, %c0_35, %c0_36], %54 {strides = array<i32>} : memref<1x32x256xf32, #tpu.memory_space<vmem>>, vector<1x32x256xf32>,
    return
  }
  func.func @transform_0(%arg0: i32, %arg1: i32) -> (i32, i32, i32) {
    %c0_i32 = arith.constant 0 : i32
    %c0_i32_0 = arith.constant 0 : i32
    return %arg0, %c0_i32, %arg1 : i32, i32, i32
  }
  func.func @transform_1(%arg0: i32, %arg1: i32) -> (i32, i32, i32) {
    %c0_i32 = arith.constant 0 : i32
    %c0_i32_0 = arith.constant 0 : i32
    return %arg0, %c0_i32, %arg1 : i32, i32, i32
  }
  func.func @transform_2(%arg0: i32, %arg1: i32) -> (i32, i32) {
    %c0_i32 = arith.constant 0 : i32
    %c0_i32_0 = arith.constant 0 : i32
    %c0_i32_1 = arith.constant 0 : i32
    return %c0_i32, %c0_i32_0 : i32, i32
  }
  func.func @transform_3(%arg0: i32, %arg1: i32) -> (i32, i32) {
    %c0_i32 = arith.constant 0 : i32
    %c0_i32_0 = arith.constant 0 : i32
    %c0_i32_1 = arith.constant 0 : i32
    return %c0_i32, %c0_i32_0 : i32, i32
  }
  func.func @transform_4(%arg0: i32, %arg1: i32) -> (i32, i32) {
    %c0_i32 = arith.constant 0 : i32
    %c0_i32_0 = arith.constant 0 : i32
    %c0_i32_1 = arith.constant 0 : i32
    return %c0_i32, %c0_i32_0 : i32, i32
  }
  func.func @transform_5(%arg0: i32, %arg1: i32) -> (i32, i32) {
    %c0_i32 = arith.constant 0 : i32
    %c0_i32_0 = arith.constant 0 : i32
    %c0_i32_1 = arith.constant 0 : i32
    return %c0_i32, %c0_i32_0 : i32, i32
  }
  func.func @transform_6(%arg0: i32, %arg1: i32) -> (i32, i32) {
    %c0_i32 = arith.constant 0 : i32
    %c0_i32_0 = arith.constant 0 : i32
    %c0_i32_1 = arith.constant 0 : i32
    return %c0_i32, %c0_i32_0 : i32, i32
  }
  func.func @transform_7(%arg0: i32, %arg1: i32) -> (i32, i32) {
    %c0_i32 = arith.constant 0 : i32
    %c0_i32_0 = arith.constant 0 : i32
    %c0_i32_1 = arith.constant 0 : i32
    return %c0_i32, %c0_i32_0 : i32, i32
  }
  func.func @transform_8(%arg0: i32, %arg1: i32) -> (i32, i32) {
    %c0_i32 = arith.constant 0 : i32
    %c0_i32_0 = arith.constant 0 : i32
    %c0_i32_1 = arith.constant 0 : i32
    return %c0_i32, %c0_i32_0 : i32, i32
  }
  func.func @transform_9(%arg0: i32, %arg1: i32) -> (i32, i32) {
    %c0_i32 = arith.constant 0 : i32
    %c0_i32_0 = arith.constant 0 : i32
    %c0_i32_1 = arith.constant 0 : i32
    return %c0_i32, %c0_i32_0 : i32, i32
  }
  func.func @transform_10(%arg0: i32, %arg1: i32) -> (i32, i32) {
    %c0_i32 = arith.constant 0 : i32
    %c0_i32_0 = arith.constant 0 : i32
    %c0_i32_1 = arith.constant 0 : i32
    return %c0_i32, %c0_i32_0 : i32, i32
  }
  func.func @transform_11(%arg0: i32, %arg1: i32) -> (i32, i32) {
    %c0_i32 = arith.constant 0 : i32
    %c0_i32_0 = arith.constant 0 : i32
    %c0_i32_1 = arith.constant 0 : i32
    return %c0_i32, %c0_i32_0 : i32, i32
  }
  func.func @transform_12(%arg0: i32, %arg1: i32) -> (i32, i32, i32) {
    %c0_i32 = arith.constant 0 : i32
    %c0_i32_0 = arith.constant 0 : i32
    return %arg0, %c0_i32, %arg1 : i32, i32, i32
  }
}

</mosaic_0001>

<bundles_post_ra>
// kernel: bilocal_fuse.1
= control target key start
LH: loop header
LB: loop body
LE: loop exit
PB: predicated region body
PF: predicated region fallthrough
CT: control target
= control target key end

     0   :  { %s1446_s21 = smov 0   ;;  %s1448_s22 = smov 0   ;;  %s1667_s0 = inlined_call_operand.vmem [shape: bf16[2,16,256], index: 0, kind: input, shape index: {}]   ;;  %s1668_s1 = inlined_call_operand.vmem [shape: bf16[2,32,256], index: 1, kind: input, shape index: {}]   ;;  %s1669_s2 = inlined_call_operand.vmem [shape: bf16[32,16], index: 2, kind: input, shape index: {}]   ;;  %s1670_s3 = inlined_call_operand.vmem [shape: f32[32,1], index: 3, kind: input, shape index: {}]   ;;  %s1671_s4 = inlined_call_operand.vmem [shape: bf16[8,32], index: 4, kind: input, shape index: {}]   ;;  %s1672_s5 = inlined_call_operand.vmem [shape: f32[8,1], index: 5, kind: input, shape index: {}]   ;;  %s1673_s6 = inlined_call_operand.vmem [shape: bf16[32,8], index: 6, kind: input, shape index: {}]   ;;  %s1674_s7 = inlined_call_operand.vmem [shape: f32[32,1], index: 7, kind: input, shape index: {}]   ;;  %s1675_s8 = inlined_call_operand.vmem [shape: bf16[8,32], index: 8, kind: input, shape index: {}]   ;;  %s1676_s9 = inlined_call_operand.vmem [shape: f32[8,1], index: 9, kind: input, shape index: {}]   ;;  %s1677_s10 = inlined_call_operand.vmem [shape: bf16[32,8], index: 10, kind: input, shape index: {}]   ;;  %s1678_s11 = inlined_call_operand.vmem [shape: f32[32,1], index: 11, kind: input, shape index: {}]   ;;  %s1679_s12 = inlined_call_operand.vmem [shape: f32[2,32,256], index: 12, kind: output, shape index: {}]  }
   0x1   :  { %s1450_s23 = smov 0  }
   0x2 LB: > { %s34_s24 = sadd.s32 1, %s1374_s22  ;;  %p1200_p0 = scmp.ge.s32.totalorder %s1378_s23, 1  ;;  %s1378_s23 = sphi %s1450_s23, %s22_s23   ;;  %s1374_s22 = sphi %s1448_s22, %s1681_s22   ;;  %s1370_s21 = sphi %s1446_s21, %s1680_s21  }
   0x3   : > { %p36_p1 = scmp.ge.s32.totalorder %s34_s24, 2  ;;  %p400_p2 = scmp.lt.s32.totalorder %s1378_s23, 3 }
   0x5   : > { %s1683_s24 = smov (%p36_p1, %s34_s24), 0  ;;  %p401_p3 = pnand %p1200_p0, %p400_p2 }
   0x6   : > { %p460_p4 = scmp.lt.s32.totalorder (!%p401_p3), %s1370_s21, 1  ;;  %v1380_v0 = vmov (!%p401_p3), 0   ;;  %v500_v1 = vld [vmem:[%s1670_s3] sm:$0xff] (!%p401_p3)  ;;  %v502_v2 = vld [vmem:[%s1670_s3 + $0x10] sm:$0xff] (!%p401_p3)  ;;  %v501_v3 = vld [vmem:[%s1670_s3 + $0x8] sm:$0xff] (!%p401_p3)  ;;  %vm544_vm0 = vcmask (!%p401_p3), 130048  }
   0x7   : > { %404 = sbr.rel (%p401_p3) target bundleno = 730 (0x2da), region = 68  ;;  %583 = vmatprep.mubr.bf16.mxu0 (!%p401_p3), %v1380_v0  ;;  %593 = vmatprep.mubr.bf16.mxu1 (!%p401_p3), %v1380_v0  ;;  %v1282_v5 = vld [vmem:[%s1669_s2] sm:$0xff] (!%p401_p3)   ;;  %v1283_v6 = vld [vmem:[%s1669_s2 + $0x8] sm:$0xff] (!%p401_p3)   ;;  %v503_v8 = vld [vmem:[%s1670_s3 + $0x18] sm:$0xff] (!%p401_p3)  ;;  %vm623_vm1 = vcmask (!%p401_p3), 261120   ;;  %vm717_vm2 = vcmask (!%p401_p3), 1043456  }
   0x8   : > { %1277 = vset.pattern.permute.xlu0 (!%p401_p3), %v1380_v0  ;;  %1278 = vset.pattern.permute.xlu1 (!%p401_p3), %v1380_v0  ;;  %v617_v9 = vld [vmem:[%s1672_s5] sm:$0xff] (!%p401_p3)  ;;  %v677_v20 = vld [vmem:[%s1674_s7 + $0x8] sm:$0xff] (!%p401_p3)  ;;  %v678_v21 = vld [vmem:[%s1674_s7 + $0x10] sm:$0xff] (!%p401_p3)  ;;  %vm710_vm3 = vcmask (!%p401_p3), 64512  }
   0x9   : > { %506 = vperm.xlu0 (!%p401_p3), %1277, %v500_v1   ;;  %516 = vperm.xlu1 (!%p401_p3), %1278, %v502_v2   ;;  %v826_v15 = vld [vmem:[%s1676_s9] sm:$0xff] (!%p401_p3)  ;;  %v679_v23 = vld [vmem:[%s1674_s7 + $0x18] sm:$0xff] (!%p401_p3)  ;;  %v905_v25 = vld [vmem:[%s1678_s11 + $0x8] sm:$0xff] (!%p401_p3) }
   0xa   : > { %v676_v18 = vld [vmem:[%s1674_s7] sm:$0xff] (!%p401_p3)  ;;  %v906_v26 = vld [vmem:[%s1678_s11 + $0x10] sm:$0xff] (!%p401_p3)  ;;  %v907_v27 = vld [vmem:[%s1678_s11 + $0x18] sm:$0xff] (!%p401_p3) }
   0xb   : > { %v825_v22 = vld [vmem:[%s1675_s8] sm:$0xf] (!%p401_p3) }
   0xc   : > { %v904_v24 = vld [vmem:[%s1678_s11] sm:$0xff] (!%p401_p3) }
   0xd   : > { %511 = vperm.xlu0 (!%p401_p3), %1277, %v501_v3   ;;  %521 = vperm.xlu1 (!%p401_p3), %1278, %v503_v8  }
   0xe   : > { %s1685_s21 = smov (!%p460_p4, %s1370_s21), 1 }
   0xf   : > { %s1247_s29 = sshll.u32 %s1685_s21, 4  ;;  %s1248_s25 = sshll.u32 %s1685_s21, 5 }
  0x10   : > { %s467_s16 = scalar_lea.vmem %s1667_s0, %s1247_s29  ;;  %s477_s28 = scalar_lea.vmem %s1668_s1, %s1248_s25 }
  0x11   : > { %v1279_v4 = vld [vmem:[%s467_s16 + $0x4] ss:$8 sps:$4 sm:$0xff]   ;;  %v1281_v7 = vld [vmem:[%s467_s16] ss:$8 sps:$4 sm:$0xff]   ;;  %v1503_v12 = vld [vmem:[%s477_s28 + $0x10] sm:$0xff]  ;;  %620 = vperm.xlu0 %1277, %v617_v9   ;;  %829 = vperm.xlu1 %1278, %v826_v15   ;;  %s1249_s17 = sshll.u32 %s1685_s21, 6 }
  0x12   : > { %551 = vmatprep.subr.bf16.mxu0 %v1279_v4  ;;  %1250 = vmatprep.subr.bf16.mxu1 %v1279_v4  ;;  %v1499_v10 = vld [vmem:[%s477_s28] sm:$0xff]  ;;  %v1501_v11 = vld [vmem:[%s477_s28 + $0x8] sm:$0xff]  ;;  %v1507_v14 = vld [vmem:[%s477_s28 + $0x18] sm:$0xff]  ;;  %s1630_s20 = scalar_lea.vmem %s1679_s12, %s1249_s17 }
  0x13   : > { %552 = vmatpush1.bf16.msra.mxu0 %v1281_v7  ;;  %1251 = vmatpush1.bf16.msra.mxu1 %v1281_v7  ;;  %v1228_v13 = vcombine.high %v1499_v10, %v1501_v11  ;;  %v1227_v16 = vcombine.low %v1499_v10, %v1501_v11  ;;  %v1230_v17 = vcombine.high %v1503_v12, %v1507_v14  ;;  %v616_v9 = vld [vmem:[%s1671_s4] sm:$0xf]  ;;  %v1289_v15 = vld [vmem:[%s1677_s10 + $0x8] sm:$0xff]  }
  0x14   : > { %v1229_v19 = vcombine.low %v1503_v12, %v1507_v14 }
  0x15   : > { %855 = vmatprep.subr.bf16.mxu0 %v1228_v13  ;;  %682 = vperm.xlu0 %1277, %v676_v18   ;;  %v1288_v13 = vld [vmem:[%s1677_s10] sm:$0xff]  }
  0x16   : > { %1211 = vmatmul.mubr.msk.bf16.vlgmr.msra.gmra.mrb[0].mxu0 %vm544_vm0, %v1282_v5  ;;  %1212 = vmatmul.mubr.msk.bf16.vlgmr.msra.gmra.mrb[0].mxu1 %vm544_vm0, %v1283_v6 }
  0x17   : > { %856 = vmatpush1.bf16.msra.mxu0 %v1227_v16  ;;  %887 = vmatprep.mubr.bf16.mxu0 %v1380_v0 }
  0x18   : > { %857 = vmatprep.subr.bf16.mxu0 %v1230_v17  ;;  %659 = vmatprep.mubr.bf16.mxu1 %v1380_v0 }
  0x19   : > { %687 = vperm.xlu1 %1278, %v677_v20   ;;  %692 = vperm.xlu0 %1277, %v678_v21  }
  0x1b   : > { %858 = vmatpush1.bf16.msra.mxu0 %v1229_v19 }
  0x1d   : > { %697 = vperm.xlu1 %1278, %v679_v23   ;;  %910 = vperm.xlu0 %1277, %v904_v24  }
  0x1e   : > { %1231 = vmatmul.mubr.msk.bf16.vlgmr.msra.gmra.mrb[4].mxu0 %vm623_vm1, %v825_v22 }
  0x1f   : > { %982 = vmatprep.mubr.bf16.mxu0 %v1380_v0 }
  0x21   : > { %915 = vperm.xlu1 %1278, %v905_v25   ;;  %920 = vperm.xlu0 %1277, %v906_v26  }
  0x25   : > { %925 = vperm.xlu1 %1278, %v907_v27  }
  0x88   : > { %v507_v28 = vpop.permute.xlu0 %506  ;;  %v517_v29 = vpop.permute.xlu1 %516 }
  0x8c   : > { %v512_v30 = vpop.permute.xlu0 %511  ;;  %v522_v31 = vpop.permute.xlu1 %521 }
  0x90   : > { %v830_v54 = vpop.permute.xlu1 %829  ;;  %v621_v16 = vpop.permute.xlu0 %620 }
  0xe9   : > { %v585_v32 = vpop.f32.mrb[0].mxu0  ;;  %v595_v33 = vpop.f32.mrb[0].mxu1 }
  0xea   : > { %v587_v34 = vpop.f32.mrb[1].mxu0  ;;  %v597_v35 = vpop.f32.mrb[1].mxu1  ;;  %v1553_v40 = vadd.f32 %v585_v32, %v507_v28  ;;  %v1561_v46 = vadd.f32 %v595_v33, %v517_v29  ;;  %v1290_v32 = vld [vmem:[%s1673_s6] sm:$0xff]  }
  0xeb   : > { %v1549_v36 = vadd.f32 %v587_v34, %v507_v28  ;;  %v1551_v37 = vadd.f32 %v597_v35, %v517_v29  ;;  %v589_v38 = vpop.f32.mrb[2].mxu0  ;;  %v599_v39 = vpop.f32.mrb[2].mxu1 }
  0xec   : > { %v1555_v41 = vadd.f32 %v589_v38, %v512_v30  ;;  %v591_v42 = vpop.f32.mrb[3].mxu0  ;;  %v601_v43 = vpop.f32.mrb[3].mxu1  ;;  %v1564_v48 = vadd.f32 %v599_v39, %v522_v31  ;;  %v604_v53 = vmax.f32 %v1553_v40, 0.0  ;;  %v608_v57 = vmax.f32 %v1561_v46, 0.0  ;;  %v1291_v39 = vld [vmem:[%s1673_s6 + $0x8] sm:$0xff]  }
  0xed   : > { %v1557_v44 = vadd.f32 %v591_v42, %v512_v30  ;;  %v1559_v45 = vadd.f32 %v601_v43, %v522_v31  ;;  %v605_v49 = vmax.f32 %v1549_v36, 0.0  ;;  %v609_v50 = vmax.f32 %v1551_v37, 0.0  ;;  %v683_v42 = vpop.permute.xlu0 %682  ;;  %v688_v43 = vpop.permute.xlu1 %687 }
  0xee   : > { %v606_v47 = vmax.f32 %v1555_v41, 0.0  ;;  %v610_v59 = vmax.f32 %v1564_v48, 0.0  ;;  %v1055_v36 = vunpack.c.l.bf16 %v1503_v12 }
  0xef   : > { %v607_v51 = vmax.f32 %v1557_v44, 0.0  ;;  %v611_v52 = vmax.f32 %v1559_v45, 0.0  ;;  %v1058_v44 = vunpack.c.h.bf16 %v1507_v14 }
  0xf0   : > { %v612_v58 = vpack.c.bf16 %v606_v47, %v604_v53  ;;  %v614_v5 = vpack.c.bf16 %v610_v59, %v608_v57 }
  0xf1   : > { %v613_v55 = vpack.c.bf16 %v607_v51, %v605_v49  ;;  %v889_v56 = vpop.f32.mrb[4].mxu0  ;;  %v615_v62 = vpack.c.bf16 %v611_v52, %v609_v50 }
  0xf2   : > { %v890_v60 = vadd.f32 %v889_v56, %v830_v54  ;;  %v891_v61 = vpop.f32.mrb[5].mxu0 }
  0xf3   : > { %v892_v63 = vadd.f32 %v891_v61, %v830_v54  ;;  %627 = vmatprep.subr.bf16.mxu1 %v613_v55  ;;  %v893_v1 = vpop.f32.mrb[6].mxu0  ;;  %v693_v54 = vpop.permute.xlu0 %692 }
  0xf4   : > { %v896_v2 = vmax.f32 %v890_v60, 0.0  ;;  %628 = vmatpush1.bf16.msra.mxu1 %v612_v58  ;;  %v894_v3 = vpop.f32.mrb[7].mxu0  ;;  %v1616_v55 = vpop.permute.xlu1 %697 }
  0xf5   : > { %v897_v4 = vmax.f32 %v892_v63, 0.0  ;;  %629 = vmatprep.subr.bf16.mxu1 %v615_v62 }
  0xf6   : > { %v898_v6 = vpack.c.bf16 %v896_v2, %v896_v2 }
  0xf7   : > { %v899_v7 = vpack.c.bf16 %v897_v4, %v897_v4  ;;  %v911_v56 = vpop.permute.xlu0 %910 }
  0xf8   : > { %630 = vmatpush1.bf16.msra.mxu1 %v614_v5  ;;  %v945_v8 = vsel %vm717_vm2, %v898_v6, 0  ;;  %v916_v60 = vpop.permute.xlu1 %915 }
  0xf9   : > { %1234 = vmatprep.subr.msk.bf16.mxu0 %vm717_vm2, %v899_v7 }
  0xfa   : > { %951 = vmatpush1.bf16.msra.mxu0 %v945_v8 }
  0xfb   : > { %1213 = vmatmul.mubr.msk.bf16.vlgmr.msra.gmra.mrb[4].mxu1 %vm623_vm1, %v616_v9 }
  0xfc   : > { %756 = vmatprep.mubr.bf16.mxu1 %v1380_v0  ;;  %v926_v5 = vpop.permute.xlu1 %925 }
  0xfd   : > { %1235 = vmatmul.mubr.msk.bf16.vlgmr.msra.gmra.mrb[8].mxu0 %vm710_vm3, %v1288_v13 }
  0xfe   : > { %992 = vmatprep.mubr.bf16.mxu0 %v1380_v0 }
 0x105   : > { %1236 = vmatmul.mubr.msk.bf16.gmra.mrb[12].mxu0 %vm710_vm3, %v1289_v15 }
 0x1ce   : > { %v661_v17 = vpop.f32.mrb[4].mxu1 }
 0x1cf   : > { %v662_v18 = vadd.f32 %v661_v17, %v621_v16  ;;  %v663_v19 = vpop.f32.mrb[5].mxu1 }
 0x1d0   : > { %v664_v20 = vadd.f32 %v663_v19, %v621_v16  ;;  %v665_v21 = vpop.f32.mrb[6].mxu1  ;;  %v984_v22 = vpop.f32.mrb[8].mxu0 }
 0x1d1   : > { %v668_v23 = vmax.f32 %v662_v18, 0.0  ;;  %v666_v24 = vpop.f32.mrb[7].mxu1  ;;  %v986_v25 = vpop.f32.mrb[9].mxu0  ;;  %v985_v58 = vadd.f32 %v984_v22, %v911_v56 }
 0x1d2   : > { %v669_v26 = vmax.f32 %v664_v20, 0.0  ;;  %v988_v27 = vpop.f32.mrb[10].mxu0  ;;  %v987_v61 = vadd.f32 %v986_v25, %v911_v56 }
 0x1d3   : > { %v670_v28 = vpack.c.bf16 %v668_v23, %v668_v23  ;;  %v990_v29 = vpop.f32.mrb[11].mxu0  ;;  %v989_v62 = vadd.f32 %v988_v27, %v916_v60  ;;  %v1237_v63 = vmul.f32 -1.442695, %v985_v58 }
 0x1d4   : > { %v671_v30 = vpack.c.bf16 %v669_v26, %v669_v26  ;;  %v1238_v1 = vmul.f32 -1.442695, %v987_v61  ;;  %v991_v3 = vadd.f32 %v990_v29, %v916_v60 }
 0x1d5   : > { %v719_v31 = vsel %vm717_vm2, %v670_v28, 0  ;;  %v1239_v2 = vmul.f32 -1.442695, %v989_v62  ;;  %1292 = vpow2.f32 %v1237_v63 }
 0x1d6   : > { %1216 = vmatprep.subr.msk.bf16.mxu1 %vm717_vm2, %v671_v30  ;;  %1294 = vpow2.f32 %v1238_v1  ;;  %v1240_v8 = vmul.f32 -1.442695, %v991_v3 }
 0x1d7   : > { %725 = vmatpush1.bf16.msra.mxu1 %v719_v31  ;;  %1296 = vpow2.f32 %v1239_v2 }
 0x1d8   : > { %v994_v33 = vpop.f32.mrb[12].mxu0  ;;  %1298 = vpow2.f32 %v1240_v8 }
 0x1d9   : > { %v996_v34 = vpop.f32.mrb[13].mxu0 }
 0x1da   : > { %1217 = vmatmul.mubr.msk.bf16.vlgmr.msra.gmra.mrb[8].mxu1 %vm710_vm3, %v1290_v32  ;;  %v998_v35 = vpop.f32.mrb[14].mxu0 }
 0x1db   : > { %v1000_v38 = vpop.f32.mrb[15].mxu0  ;;  %766 = vmatprep.mubr.bf16.mxu1 %v1380_v0  ;;  %v921_v0 = vpop.permute.xlu0 %920  ;;  %v999_v7 = vadd.f32 %v998_v35, %v926_v5 }
 0x1dc   : > { %v995_v4 = vadd.f32 %v994_v33, %v921_v0  ;;  %v997_v6 = vadd.f32 %v996_v34, %v921_v0  ;;  %v1001_v9 = vadd.f32 %v1000_v38, %v926_v5 }
 0x1dd   : > { %v1243_v16 = vmul.f32 -1.442695, %v999_v7 }
 0x1de   : > { %v1241_v13 = vmul.f32 -1.442695, %v995_v4  ;;  %v1242_v15 = vmul.f32 -1.442695, %v997_v6  ;;  %v1244_v17 = vmul.f32 -1.442695, %v1001_v9 }
 0x1df   : > { %v1293_v23 = vpop.eup %1292 }
 0x1e0   : > { %1300 = vpow2.f32 %v1241_v13  ;;  %v1295_v27 = vpop.eup %1294  ;;  %v1027_v32 = vadd.f32 1.0, %v1293_v23 }
 0x1e1   : > { %1302 = vpow2.f32 %v1242_v15  ;;  %v1297_v30 = vpop.eup %1296  ;;  %v1028_v34 = vadd.f32 1.0, %v1295_v27 }
 0x1e2   : > { %1218 = vmatmul.mubr.msk.bf16.gmra.mrb[12].mxu1 %vm710_vm3, %v1291_v39  ;;  %1304 = vpow2.f32 %v1243_v16  ;;  %v1029_v35 = vadd.f32 1.0, %v1297_v30  ;;  %v1299_v56 = vpop.eup %1298 }
 0x1e3   : > { %1306 = vpow2.f32 %v1244_v17  ;;  %v1030_v4 = vadd.f32 1.0, %v1299_v56 }
 0x1ea   : > { %v1301_v61 = vpop.eup %1300 }
 0x1eb   : > { %v1303_v1 = vpop.eup %1302  ;;  %v1031_v17 = vadd.f32 1.0, %v1301_v61 }
 0x1ec   : > { %v1305_v3 = vpop.eup %1304 }
 0x1ed   : > { %v1307_v6 = vpop.eup %1306 }
 0x1ee   : > { %v1034_v23 = vadd.f32 1.0, %v1307_v6  ;;  %v1057_v6 = vunpack.c.l.bf16 %v1507_v14 }
 0x2ad   : > { %v758_v18 = vpop.f32.mrb[8].mxu1 }
 0x2ae   : > { %v759_v19 = vadd.f32 %v758_v18, %v683_v42  ;;  %v760_v20 = vpop.f32.mrb[9].mxu1 }
 0x2af   : > { %v761_v21 = vadd.f32 %v760_v20, %v683_v42  ;;  %v762_v22 = vpop.f32.mrb[10].mxu1 }
 0x2b0   : > { %v1219_v24 = vmul.f32 -1.442695, %v759_v19  ;;  %v763_v25 = vadd.f32 %v762_v22, %v688_v43  ;;  %v764_v26 = vpop.f32.mrb[11].mxu1 }
 0x2b1   : > { %v1220_v28 = vmul.f32 -1.442695, %v761_v21  ;;  %v765_v29 = vadd.f32 %v764_v26, %v688_v43  ;;  %v1033_v21 = vadd.f32 1.0, %v1305_v3 }
 0x2b2   : > { %1308 = vpow2.f32 %v1219_v24  ;;  %v1221_v31 = vmul.f32 -1.442695, %v763_v25 }
 0x2b3   : > { %1310 = vpow2.f32 %v1220_v28  ;;  %v1222_v33 = vmul.f32 -1.442695, %v765_v29  ;;  %v1051_v29 = vunpack.c.l.bf16 %v1499_v10 }
 0x2b4   : > { %1312 = vpow2.f32 %v1221_v31 }
 0x2b5   : > { %1314 = vpow2.f32 %v1222_v33  ;;  %v768_v38 = vpop.f32.mrb[12].mxu1 }
 0x2b6   : > { %v769_v39 = vadd.f32 %v768_v38, %v693_v54  ;;  %v770_v42 = vpop.f32.mrb[13].mxu1  ;;  %1316 = vrcp.f32 %v1027_v32  ;;  %v1052_v32 = vunpack.c.h.bf16 %v1499_v10 }
 0x2b7   : > { %v771_v58 = vadd.f32 %v770_v42, %v693_v54  ;;  %v772_v60 = vpop.f32.mrb[14].mxu1  ;;  %1318 = vrcp.f32 %v1028_v34  ;;  %v1054_v42 = vunpack.c.h.bf16 %v1501_v11 }
 0x2b8   : > { %v1223_v43 = vmul.f32 -1.442695, %v769_v39  ;;  %v773_v62 = vadd.f32 %v772_v60, %v1616_v55  ;;  %v774_v63 = vpop.f32.mrb[15].mxu1  ;;  %1320 = vrcp.f32 %v1029_v35  ;;  %v1053_v35 = vunpack.c.l.bf16 %v1501_v11 }
 0x2b9   : > { %v1224_v2 = vmul.f32 -1.442695, %v771_v58  ;;  %v775_v0 = vadd.f32 %v774_v63, %v1616_v55  ;;  %v1032_v55 = vadd.f32 1.0, %v1303_v1 }
 0x2ba   : > { %1322 = vpow2.f32 %v1223_v43  ;;  %v1225_v5 = vmul.f32 -1.442695, %v773_v62 }
 0x2bb   : > { %1324 = vpow2.f32 %v1224_v2  ;;  %v1226_v7 = vmul.f32 -1.442695, %v775_v0 }
 0x2bc   : > { %v1309_v54 = vpop.eup %1308  ;;  %1326 = vpow2.f32 %v1225_v5  ;;  %v1056_v5 = vunpack.c.h.bf16 %v1503_v12 }
 0x2bd   : > { %v1311_v8 = vpop.eup %1310  ;;  %v801_v9 = vadd.f32 1.0, %v1309_v54  ;;  %1328 = vpow2.f32 %v1226_v7 }
 0x2be   : > { %v1313_v13 = vpop.eup %1312  ;;  %1330 = vrcp.f32 %v1030_v4  ;;  %v802_v15 = vadd.f32 1.0, %v1311_v8 }
 0x2bf   : > { %v1315_v16 = vpop.eup %1314  ;;  %1332 = vrcp.f32 %v801_v9  ;;  %v803_v18 = vadd.f32 1.0, %v1313_v13 }
 0x2c0   : > { %1334 = vrcp.f32 %v802_v15  ;;  %v804_v19 = vadd.f32 1.0, %v1315_v16  ;;  %v1317_v20 = vpop.eup %1316 }
 0x2c1   : > { %1336 = vrcp.f32 %v803_v18  ;;  %v1319_v22 = vpop.eup %1318  ;;  %v1067_v58 = vmul.f32 %v1317_v20, %v604_v53 }
 0x2c2   : > { %1338 = vrcp.f32 %v804_v19  ;;  %v1321_v24 = vpop.eup %1320  ;;  %v1068_v10 = vmul.f32 %v1319_v22, %v605_v49 }
 0x2c3   : > { %1340 = vrcp.f32 %v1031_v17  ;;  %v1069_v62 = vmul.f32 %v1321_v24, %v606_v47 }
 0x2c4   : > { %v1323_v25 = vpop.eup %1322  ;;  %1342 = vrcp.f32 %v1032_v55 }
 0x2c5   : > { %v1325_v26 = vpop.eup %1324  ;;  %1344 = vrcp.f32 %v1033_v21  ;;  %v805_v27 = vadd.f32 1.0, %v1323_v25 }
 0x2c6   : > { %v1327_v28 = vpop.eup %1326  ;;  %1346 = vrcp.f32 %v1034_v23  ;;  %v806_v30 = vadd.f32 1.0, %v1325_v26 }
 0x2c7   : > { %v1329_v31 = vpop.eup %1328  ;;  %1348 = vrcp.f32 %v805_v27  ;;  %v807_v33 = vadd.f32 1.0, %v1327_v28 }
 0x2c8   : > { %v1331_v34 = vpop.eup %1330  ;;  %1350 = vrcp.f32 %v806_v30  ;;  %v808_v38 = vadd.f32 1.0, %v1329_v31 }
 0x2c9   : > { %v1333_v39 = vpop.eup %1332  ;;  %1352 = vrcp.f32 %v807_v33  ;;  %v1070_v1 = vmul.f32 %v1331_v34, %v607_v51 }
 0x2ca   : > { %v1335_v56 = vpop.eup %1334  ;;  %v1059_v60 = vmul.f32 %v1333_v39, %v1051_v29  ;;  %1354 = vrcp.f32 %v808_v38 }
 0x2cb   : > { %v1337_v61 = vpop.eup %1336  ;;  %v1060_v43 = vmul.f32 %v1335_v56, %v1052_v32 }
 0x2cc   : > { %v1339_v11 = vpop.eup %1338  ;;  %v1075_v40 = vadd.f32 %v1067_v58, %v1059_v60  ;;  %v1061_v53 = vmul.f32 %v1337_v61, %v1053_v35 }
 0x2cd   : > { %v1341_v63 = vpop.eup %1340  ;;  %v1076_v2 = vadd.f32 %v1068_v10, %v1060_v43  ;;  %v1062_v0 = vmul.f32 %v1339_v11, %v1054_v42 }
 0x2ce   : > { %v1343_v3 = vpop.eup %1342  ;;  %1083 = vst [vmem:[%s1630_s20] sm:$0xff] %v1075_v40  ;;  %v1077_v49 = vadd.f32 %v1069_v62, %v1061_v53  ;;  %v1071_v54 = vmul.f32 %v1341_v63, %v608_v57 }
 0x2cf   : > { %v1345_v4 = vpop.eup %1344  ;;  %1084 = vst [vmem:[%s1630_s20 + $0x8] sm:$0xff] %v1076_v2  ;;  %v1078_v41 = vadd.f32 %v1070_v1, %v1062_v0  ;;  %v1072_v9 = vmul.f32 %v1343_v3, %v609_v50 }
 0x2d0   : > { %v1347_v47 = vpop.eup %1346  ;;  %1085 = vst [vmem:[%s1630_s20 + $0x10] sm:$0xff] %v1077_v49  ;;  %v1073_v16 = vmul.f32 %v1345_v4, %v610_v59 }
 0x2d1   : > { %v1349_v7 = vpop.eup %1348  ;;  %1086 = vst [vmem:[%s1630_s20 + $0x18] sm:$0xff] %v1078_v41  ;;  %v1074_v18 = vmul.f32 %v1347_v47, %v611_v52 }
 0x2d2   : > { %v1351_v51 = vpop.eup %1350  ;;  %v1063_v8 = vmul.f32 %v1349_v7, %v1055_v36 }
 0x2d3   : > { %v1353_v12 = vpop.eup %1352  ;;  %v1064_v13 = vmul.f32 %v1351_v51, %v1056_v5 }
 0x2d4   : > { %v1355_v15 = vpop.eup %1354  ;;  %v1079_v17 = vadd.f32 %v1071_v54, %v1063_v8  ;;  %v1065_v14 = vmul.f32 %v1353_v12, %v1057_v6 }
 0x2d5   : > { %v1080_v55 = vadd.f32 %v1072_v9, %v1064_v13  ;;  %v1066_v46 = vmul.f32 %v1355_v15, %v1058_v44 }
 0x2d6   : > { %1087 = vst [vmem:[%s1630_s20 + $0x20] sm:$0xff] %v1079_v17  ;;  %v1081_v57 = vadd.f32 %v1073_v16, %v1065_v14 }
 0x2d7   : > { %1088 = vst [vmem:[%s1630_s20 + $0x28] sm:$0xff] %v1080_v55  ;;  %v1082_v19 = vadd.f32 %v1074_v18, %v1066_v46 }
 0x2d8   : > { %1089 = vst [vmem:[%s1630_s20 + $0x30] sm:$0xff] %v1081_v57 }
 0x2d9   : > { %1090 = vst [vmem:[%s1630_s20 + $0x38] sm:$0xff] %v1082_v19 }
 0x2da PF: > { %s22_s23 = sadd.s32 1, %s1378_s23   ;;  %s1680_s21 = smov %s1374_s22 }
 0x2db   : > { %p19_p5 = scmp.ge.s32.totalorder %s22_s23, 4   ;;  %s1681_s22 = smov %s1683_s24 }
 0x2dd   :  { %21 = sbr.rel (!%p19_p5) target bundleno = 2 (0x2), region = 101 }

</bundles_post_ra>
